<compile_context>
chip_gen: v5e
topology: v5e:2x2
jax: 0.10.0
libtpu: 0.0.40
codegen_flags: <defaults>
</compile_context>

<pallas_src>
import math
import numpy as np

import jax
import jax.numpy as jnp
from jax.experimental import pallas as pl
from jax.experimental.pallas import tpu as pltpu


def _round_up(x: int, m: int) -> int:
    return ((x + m - 1) // m) * m


def _vmem_capacity_bytes() -> int:
    """Per-TensorCore VMEM capacity; conservative 64 MiB fallback (v7x-safe)."""
    try:
        info = pltpu.get_tpu_info()
        cap = getattr(info, "vmem_capacity_bytes", None)
        if cap:
            return int(cap)
    except Exception:
        pass
    return 64 << 20


def _interp_matrix(n_in: int, scale_factor: int) -> np.ndarray:
    """Dense (n_in, n_out) matrix reproducing torch.nn.functional.interpolate
    (mode='linear', align_corners=False) so that out = w @ M."""
    n_out = int(n_in * scale_factor)
    M = np.zeros((n_in, n_out), dtype=np.float32)
    if scale_factor == 1:
        np.fill_diagonal(M, 1.0)
        return M
    ratio = n_in / n_out
    for j in range(n_out):
        src = ratio * (j + 0.5) - 0.5
        if src < 0.0:
            src = 0.0
        i0 = int(math.floor(src))
        i1 = min(i0 + 1, n_in - 1)
        l1 = src - i0
        M[i0, j] += 1.0 - l1
        M[i1, j] += l1
    return M


def _make_kernel(n_scales: int):
    def kernel(w_ref, alpha_ref, exps_ref, g_ref, m_ref, out_ref, wsc_ref, inv_ref):
        # w_ref:     (TM, S_pad)   stacked ws, f32          (moves with row step i)
        # alpha_ref: (TM, 1)       f32                      (moves with i)
        # exps_ref:  (1, S_pad)    f32 exponent per column  (resident)
        # g_ref:     (S_pad,S_pad) f32, G = M @ M.T         (resident)
        # m_ref:     (S_pad, TL)   bf16 interp-matrix tile  (moves with col step j)
        # out_ref:   (TM, TL)      normalized kernel tile   (moves with i, j)
        # wsc_ref:   (TM, S_pad)   bf16 scratch (alpha-scaled weights)
        # inv_ref:   (TM, 1)       f32 scratch (1/||row||)

        @pl.when(pl.program_id(1) == 0)
        def _():
            tm, s_pad = w_ref.shape
            w = w_ref[...]
            if n_scales > 1:
                # Hoisted broadcasts (JAX does not CSE broadcast_in_dim).
                a_full = jnp.broadcast_to(alpha_ref[...], (tm, s_pad))
                e_full = jnp.broadcast_to(exps_ref[...], (tm, s_pad))
                # alpha**i as a static select+multiply chain (pure VPU, no pow,
                # well-defined for alpha <= 0).
                scale = jnp.where(e_full >= 1.0, a_full, 1.0)
                for j in range(2, n_scales):
                    scale = scale * jnp.where(e_full >= float(j), a_full, 1.0)
                w = w * scale
            # Row norm from the small domain: ||w M||^2 = w (M M^T) w^T = (wG).w
            wg = jnp.dot(w, g_ref[...], preferred_element_type=jnp.float32)
            sumsq = jnp.sum(wg * w, axis=-1, keepdims=True)
            # +tiny keeps CH-padding (all-zero) rows at 0 instead of 0*inf=NaN.
            inv_ref[...] = jax.lax.rsqrt(sumsq + 1e-30)
            wsc_ref[...] = w.astype(jnp.bfloat16)

        # Interpolation + concat as one bf16 MXU matmul with f32 accumulation,
        # scaled by the cached reciprocal norm.  Lane-dense (mult-of-128) store.
        k = jnp.dot(wsc_ref[...], m_ref[...], preferred_element_type=jnp.float32)
        out_ref[...] = (k * inv_ref[...]).astype(out_ref.dtype)

    return kernel


def sgconv_forward(ws, alpha, L, *, out_dtype=jnp.float32, row_tile=None):
    """ws: list of (channels, H, N) arrays; alpha: (channels, H).
    Returns the normalized kernel of shape (channels, H, L)."""
    channels, H, N = ws[0].shape
    n_scales = len(ws)
    CH = channels * H
    S = n_scales * N

    # --- static interpolation matrices (glue): block-diagonal (S_pad, Ltot_pad).
    mats = [_interp_matrix(N, 2 ** max(0, i - 1)) for i in range(n_scales)]
    Ltot = sum(m.shape[1] for m in mats)
    assert Ltot >= L, f"k length {Ltot} < requested L={L}"

    S_pad = _round_up(S, 16)               # friendly sublane count for bf16 M
    # Column tiling: TL <= 2048 lanes, multiple of 128, minimal padding.
    n_col = max(1, -(-Ltot // 2048))
    TL = _round_up(-(-Ltot // n_col), 128)
    Ltot_pad = n_col * TL

    M = np.zeros((S_pad, Ltot_pad), dtype=np.float32)
    exps = np.zeros((1, S_pad), dtype=np.float32)
    col = 0
    for i, m in enumerate(mats):
        M[i * N:(i + 1) * N, col:col + m.shape[1]] = m
        exps[0, i * N:(i + 1) * N] = float(i)
        col += m.shape[1]
    G = M @ M.T                             # (S_pad, S_pad) exact row-norm Gram

    # --- generation-aware VMEM budget (fixed footprint subtracted BEFORE TM).
    cap = _vmem_capacity_bytes()
    budget = max(24 << 20, min(cap - (16 << 20), (cap * 3) // 4))  # ~48 MiB v7x, ~96 MiB v5e/v6e
    out_bytes = jnp.dtype(out_dtype).itemsize
    fixed = (2 * 2 * S_pad * TL            # double-buffered bf16 M column tile
             + 2 * 4 * S_pad * S_pad       # G (budgeted as if double-buffered)
             + 2 * 4 * S_pad               # exps
             + (4 << 20))                  # compiler scratch / misc headroom
    per_row = (2 * 4 * (S_pad + 1)         # double-buffered W + alpha tiles
               + 2 * out_bytes * TL        # double-buffered output tile
               + 2 * S_pad + 4             # bf16 w_scaled + inv_norm scratch
               + 6 * 4 * S_pad             # j==0 f32 temporaries (a,e,scale,w,wG,...)
               + 4 * TL)                   # f32 matmul result before cast/store
    tm_max = int(row_tile) if row_tile is not None else max(8, (budget - fixed) // per_row)

    ch8 = _round_up(CH, 8)
    tm = min(int(tm_max), 2048, ch8)
    if ch8 > 8:
        # Guarantee >= 2 row-grid steps so the "parallel" axis can shard
        # across both v7x TensorCores (free on 1-TC v5e/v6e).
        tm = min(tm, max(8, ((ch8 // 2) // 8) * 8))
    # MXU-friendly rounding of large tiles.
    if tm >= 512:
        tm = (tm // 256) * 256
    elif tm >= 128:
        tm = (tm // 128) * 128
    else:
        tm = max(8, (tm // 8) * 8)
    TM = tm
    CH_pad = _round_up(CH, TM)

    vmem_need = fixed + TM * per_row
    # Never clamp the limit below the need; shrinking happened on TM instead.
    vmem_limit = int(min(cap - (4 << 20), max(budget, vmem_need + (2 << 20))))

    # --- host-side packing (glue): stack ws along the basis axis, pad rows.
    W = jnp.concatenate([w.reshape(CH, N).astype(jnp.float32) for w in ws], axis=1)
    if S_pad != S:
        W = jnp.pad(W, ((0, 0), (0, S_pad - S)))
    alpha2d = alpha.reshape(CH, 1).astype(jnp.float32)
    if CH_pad != CH:
        W = jnp.pad(W, ((0, CH_pad - CH), (0, 0)))
        alpha2d = jnp.pad(alpha2d, ((0, CH_pad - CH), (0, 0)))
    M_bf16 = jnp.asarray(M, dtype=jnp.bfloat16)
    G_f32 = jnp.asarray(G, dtype=jnp.float32)
    exps_f32 = jnp.asarray(exps)

    grid = (CH_pad // TM, Ltot_pad // TL)

    def _build(single_buffer_consts: bool):
        pm = {"pipeline_mode": pl.Buffered(1)} if single_buffer_consts else {}
        in_specs = [
            pl.BlockSpec((TM, S_pad), lambda i, j: (i, 0)),          # W: moves with rows
            pl.BlockSpec((TM, 1), lambda i, j: (i, 0)),              # alpha: moves with rows
            pl.BlockSpec((1, S_pad), lambda i, j: (0, 0), **pm),     # exps: resident
            pl.BlockSpec((S_pad, S_pad), lambda i, j: (0, 0), **pm), # G: resident
            pl.BlockSpec((S_pad, TL), lambda i, j: (0, j)),          # M: moves with cols
        ]
        return pl.pallas_call(
            _make_kernel(n_scales),
            out_shape=jax.ShapeDtypeStruct((CH_pad, Ltot_pad), out_dtype),
            grid=grid,
            in_specs=in_specs,
            out_specs=pl.BlockSpec((TM, TL), lambda i, j: (i, j)),
            scratch_shapes=[pltpu.VMEM((TM, S_pad), jnp.bfloat16),   # alpha-scaled w
                            pltpu.VMEM((TM, 1), jnp.float32)],       # 1/||row||
            compiler_params=pltpu.CompilerParams(
                dimension_semantics=("parallel", "arbitrary"),
                vmem_limit_bytes=vmem_limit),
        )

    try:
        k_full = _build(True)(W, alpha2d, exps_f32, G_f32, M_bf16)
    except Exception:
        # pipeline_mode=pl.Buffered(1) not supported on this build -> default buffering.
        k_full = _build(False)(W, alpha2d, exps_f32, G_f32, M_bf16)

    # Slice off row/column padding, restore (channels, H, L) layout (glue).
    return k_full[:CH, :L].reshape(channels, H, L)


if __name__ == "__main__":
    # TODO(synk): the module caches k_norm across calls (stateful nn.Module
    # buffer); only the first-call semantics (norm recomputed from current
    # params) are kernelized here.

    def run_case(H, N, channels, n_scales, L, seed=0):
        alpha_min, alpha_max = 0.5, 1.0
        key = jax.random.PRNGKey(seed)
        keys = jax.random.split(key, n_scales + 1)
        w_scale = 1.0 / N
        ws = [jax.random.normal(keys[i], (channels, H, N), dtype=jnp.float32) * w_scale
              for i in range(n_scales)]
        alpha = alpha_min + (alpha_max - alpha_min) * jax.random.uniform(
            keys[-1], (channels, H), dtype=jnp.float32)

        k = sgconv_forward(ws, alpha, L)
        jax.block_until_ready(k)
        assert k.shape == (channels, H, L), k.shape
        assert bool(jnp.all(jnp.isfinite(k)))

        # Pure-JAX f32 reference of the same math (F.interpolate as matrix,
        # alpha^i, concat, L2-normalize over full length, slice to L).
        mats_ref = [_interp_matrix(N, 2 ** max(0, i - 1)) for i in range(n_scales)]
        ks_ref = []
        for i, (w, m) in enumerate(zip(ws, mats_ref)):
            ki = jnp.einsum('chn,nl->chl', w, jnp.asarray(m)) * (alpha[..., None] ** i)
            ks_ref.append(ki)
        k_ref = jnp.concatenate(ks_ref, axis=-1)
        k_ref = k_ref / jnp.linalg.norm(k_ref, axis=-1, keepdims=True)
        k_ref = k_ref[..., :L]
        err = float(jnp.max(jnp.abs(k - k_ref)))
        assert err < 1e-2, f"max abs error vs f32 reference: {err}"

    # Small config consistent with the module defaults (N=8, w_scale=1/N,
    # alpha in [0.5, 1]); single row-step, single column-step.
    run_case(H=4, N=8, channels=2, n_scales=3, L=16, seed=0)
    # Slightly larger config exercising >=2 row-grid steps (megacore path) and
    # 2 column-grid steps (Ltot = 4096 -> two 2048-lane tiles, j==0 scratch reuse).
    run_case(H=24, N=8, channels=2, n_scales=10, L=3000, seed=1)

    print("KERNEL_OK")
</pallas_src>

<mosaic_0001>
module attributes {stable_mosaic.version = 11 : i64} {
  func.func @kernel(%arg0: i32, %arg1: i32, %arg2: memref<8x32xf32, #tpu.memory_space<vmem>>, %arg3: memref<8x1xf32, #tpu.memory_space<vmem>>, %arg4: memref<1x32xf32, #tpu.memory_space<vmem>>, %arg5: memref<32x32xf32, #tpu.memory_space<vmem>>, %arg6: memref<32x128xbf16, #tpu.memory_space<vmem>>, %arg7: memref<8x128xf32, #tpu.memory_space<vmem>>, %arg8: memref<8x32xbf16, #tpu.memory_space<vmem>>, %arg9: memref<8x1xf32, #tpu.memory_space<vmem>>) attributes {dimension_semantics = [#tpu.dimension_semantics<parallel>, #tpu.dimension_semantics<arbitrary>], iteration_bounds = array<i64: 1, 1>, scalar_prefetch = 0 : i64, scratch_operands = 2 : i64, tpu.core_type = #tpu.core_type<tc>, window_params = [{transform_indices = @transform_0, window_bounds = array<i64: 8, 32>}, {transform_indices = @transform_1, window_bounds = array<i64: 8, 1>}, {pipeline_mode = #tpu.pipeline_mode<synchronous>, transform_indices = @transform_2, window_bounds = array<i64: 1, 32>}, {pipeline_mode = #tpu.pipeline_mode<synchronous>, transform_indices = @transform_3, window_bounds = array<i64: 32, 32>}, {transform_indices = @transform_4, window_bounds = array<i64: 32, 128>}, {transform_indices = @transform_5, window_bounds = array<i64: 8, 128>}]} {
    %c0_i32 = arith.constant 0 : i32
    %0 = arith.cmpi eq, %arg1, %c0_i32 : i32
    %1 = arith.extui %0 : i1 to i32
    %c0_i32_0 = arith.constant 0 : i32
    %2 = arith.cmpi ne, %1, %c0_i32_0 : i32
    scf.if %2 {
      %c0_8 = arith.constant 0 : index
      %c0_9 = arith.constant 0 : index
      %10 = vector.load %arg2[%c0_8, %c0_9] : memref<8x32xf32, #tpu.memory_space<vmem>>, vector<8x32xf32>
      %c0_10 = arith.constant 0 : index
      %c0_11 = arith.constant 0 : index
      %11 = vector.load %arg3[%c0_10, %c0_11] : memref<8x1xf32, #tpu.memory_space<vmem>>, vector<8x1xf32>
      %12 = vector.shape_cast %11 : vector<8x1xf32> to vector<8x1xf32>
      %13 = vector.broadcast %12 : vector<8x1xf32> to vector<8x32xf32>
      %c0_12 = arith.constant 0 : index
      %c0_13 = arith.constant 0 : index
      %14 = vector.load %arg4[%c0_12, %c0_13] : memref<1x32xf32, #tpu.memory_space<vmem>>, vector<1x32xf32>
      %15 = vector.shape_cast %14 : vector<1x32xf32> to vector<1x32xf32>
      %16 = vector.broadcast %15 : vector<1x32xf32> to vector<8x32xf32>
      %cst_14 = arith.constant 1.000000e+00 : f32
      %17 = vector.broadcast %cst_14 : f32 to vector<8x32xf32>
      %18 = arith.cmpf oge, %16, %17 : vector<8x32xf32>
      %cst_15 = arith.constant 1.000000e+00 : f32
      %19 = vector.broadcast %cst_15 : f32 to vector<8x32xf32>
      %20 = arith.select %18, %13, %19 : vector<8x32xi1>, vector<8x32xf32>
      %cst_16 = arith.constant 2.000000e+00 : f32
      %21 = vector.broadcast %cst_16 : f32 to vector<8x32xf32>
      %22 = arith.cmpf oge, %16, %21 : vector<8x32xf32>
      %cst_17 = arith.constant 1.000000e+00 : f32
      %23 = vector.broadcast %cst_17 : f32 to vector<8x32xf32>
      %24 = arith.select %22, %13, %23 : vector<8x32xi1>, vector<8x32xf32>
      %25 = arith.mulf %20, %24 : vector<8x32xf32>
      %26 = arith.mulf %10, %25 : vector<8x32xf32>
      %c0_18 = arith.constant 0 : index
      %c0_19 = arith.constant 0 : index
      %27 = vector.load %arg5[%c0_18, %c0_19] : memref<32x32xf32, #tpu.memory_space<vmem>>, vector<32x32xf32>
      %cst_20 = arith.constant dense<0.000000e+00> : vector<8x32xf32>
      %28 = tpu.matmul %26, %27, %cst_20 {dimension_numbers = #tpu.dot_dimension_numbers<[1], [0], [0], [1], [0, 0, 1, 1], [], []>} : vector<8x32xf32>, vector<32x32xf32>, vector<8x32xf32> -> vector<8x32xf32>
      %29 = arith.mulf %28, %26 : vector<8x32xf32>
      %cst_21 = arith.constant dense<0.000000e+00> : vector<8xf32>
      %30 = vector.multi_reduction <add>, %29, %cst_21 [1] : vector<8x32xf32> to vector<8xf32>
      %31 = vector.shape_cast %30 : vector<8xf32> to vector<8x1xf32>
      %cst_22 = arith.constant 1.000000e-30 : f32
      %32 = vector.broadcast %cst_22 : f32 to vector<8x1xf32>
      %33 = arith.addf %31, %32 : vector<8x1xf32>
      %34 = math.rsqrt %33 : vector<8x1xf32>
      %c0_23 = arith.constant 0 : index
      %c0_24 = arith.constant 0 : index
      %35 = vector.load %arg9[%c0_23, %c0_24] : memref<8x1xf32, #tpu.memory_space<vmem>>, vector<8x1xf32>
      tpu.vector_store %arg9[%c0_23, %c0_24], %34 {strides = array<i32>} : memref<8x1xf32, #tpu.memory_space<vmem>>, vector<8x1xf32>,
      %36 = arith.truncf %26 : vector<8x32xf32> to vector<8x32xbf16>
      %c0_25 = arith.constant 0 : index
      %c0_26 = arith.constant 0 : index
      %37 = vector.load %arg8[%c0_25, %c0_26] : memref<8x32xbf16, #tpu.memory_space<vmem>>, vector<8x32xbf16>
      tpu.vector_store %arg8[%c0_25, %c0_26], %36 {strides = array<i32>} : memref<8x32xbf16, #tpu.memory_space<vmem>>, vector<8x32xbf16>,
    } else {
    }
    %c0 = arith.constant 0 : index
    %c0_1 = arith.constant 0 : index
    %3 = vector.load %arg8[%c0, %c0_1] : memref<8x32xbf16, #tpu.memory_space<vmem>>, vector<8x32xbf16>
    %c0_2 = arith.constant 0 : index
    %c0_3 = arith.constant 0 : index
    %4 = vector.load %arg6[%c0_2, %c0_3] : memref<32x128xbf16, #tpu.memory_space<vmem>>, vector<32x128xbf16>
    %cst = arith.constant dense<0.000000e+00> : vector<8x128xf32>
    %5 = tpu.matmul %3, %4, %cst {dimension_numbers = #tpu.dot_dimension_numbers<[1], [0], [0], [1], [0, 0, 1, 1], [], []>} : vector<8x32xbf16>, vector<32x128xbf16>, vector<8x128xf32> -> vector<8x128xf32>
    %c0_4 = arith.constant 0 : index
    %c0_5 = arith.constant 0 : index
    %6 = vector.load %arg9[%c0_4, %c0_5] : memref<8x1xf32, #tpu.memory_space<vmem>>, vector<8x1xf32>
    %7 = vector.broadcast %6 : vector<8x1xf32> to vector<8x128xf32>
    %8 = arith.mulf %5, %7 : vector<8x128xf32>
    %c0_6 = arith.constant 0 : index
    %c0_7 = arith.constant 0 : index
    %9 = vector.load %arg7[%c0_6, %c0_7] : memref<8x128xf32, #tpu.memory_space<vmem>>, vector<8x128xf32>
    tpu.vector_store %arg7[%c0_6, %c0_7], %8 {strides = array<i32>} : memref<8x128xf32, #tpu.memory_space<vmem>>, vector<8x128xf32>,
    return
  }
  func.func @transform_0(%arg0: i32, %arg1: i32) -> (i32, i32) {
    %c0_i32 = arith.constant 0 : i32
    %c0_i32_0 = arith.constant 0 : i32
    return %arg0, %c0_i32 : i32, i32
  }
  func.func @transform_1(%arg0: i32, %arg1: i32) -> (i32, i32) {
    %c0_i32 = arith.constant 0 : i32
    %c0_i32_0 = arith.constant 0 : i32
    return %arg0, %c0_i32 : i32, i32
  }
  func.func @transform_2(%arg0: i32, %arg1: i32) -> (i32, i32) {
    %c0_i32 = arith.constant 0 : i32
    %c0_i32_0 = arith.constant 0 : i32
    %c0_i32_1 = arith.constant 0 : i32
    return %c0_i32, %c0_i32_0 : i32, i32
  }
  func.func @transform_3(%arg0: i32, %arg1: i32) -> (i32, i32) {
    %c0_i32 = arith.constant 0 : i32
    %c0_i32_0 = arith.constant 0 : i32
    %c0_i32_1 = arith.constant 0 : i32
    return %c0_i32, %c0_i32_0 : i32, i32
  }
  func.func @transform_4(%arg0: i32, %arg1: i32) -> (i32, i32) {
    %c0_i32 = arith.constant 0 : i32
    %c0_i32_0 = arith.constant 0 : i32
    return %c0_i32, %arg1 : i32, i32
  }
  func.func @transform_5(%arg0: i32, %arg1: i32) -> (i32, i32) {
    %c0_i32 = arith.constant 0 : i32
    return %arg0, %arg1 : i32, i32
  }
}

module attributes {stable_mosaic.version = 11 : i64} {
  func.func @kernel(%arg0: i32, %arg1: i32, %arg2: memref<8x32xf32, #tpu.memory_space<vmem>>, %arg3: memref<8x1xf32, #tpu.memory_space<vmem>>, %arg4: memref<1x32xf32, #tpu.memory_space<vmem>>, %arg5: memref<32x32xf32, #tpu.memory_space<vmem>>, %arg6: memref<32x128xbf16, #tpu.memory_space<vmem>>, %arg7: memref<8x128xf32, #tpu.memory_space<vmem>>, %arg8: memref<8x32xbf16, #tpu.memory_space<vmem>>, %arg9: memref<8x1xf32, #tpu.memory_space<vmem>>) attributes {dimension_semantics = [#tpu.dimension_semantics<parallel>, #tpu.dimension_semantics<arbitrary>], iteration_bounds = array<i64: 1, 1>, scalar_prefetch = 0 : i64, scratch_operands = 2 : i64, tpu.core_type = #tpu.core_type<tc>, window_params = [{transform_indices = @transform_0, window_bounds = array<i64: 8, 32>}, {transform_indices = @transform_1, window_bounds = array<i64: 8, 1>}, {pipeline_mode = #tpu.pipeline_mode<synchronous>, transform_indices = @transform_2, window_bounds = array<i64: 1, 32>}, {pipeline_mode = #tpu.pipeline_mode<synchronous>, transform_indices = @transform_3, window_bounds = array<i64: 32, 32>}, {transform_indices = @transform_4, window_bounds = array<i64: 32, 128>}, {transform_indices = @transform_5, window_bounds = array<i64: 8, 128>}]} {
    %c0_i32 = arith.constant 0 : i32
    %0 = arith.cmpi eq, %arg1, %c0_i32 : i32
    %1 = arith.extui %0 : i1 to i32
    %c0_i32_0 = arith.constant 0 : i32
    %2 = arith.cmpi ne, %1, %c0_i32_0 : i32
    scf.if %2 {
      %c0_8 = arith.constant 0 : index
      %c0_9 = arith.constant 0 : index
      %10 = vector.load %arg2[%c0_8, %c0_9] : memref<8x32xf32, #tpu.memory_space<vmem>>, vector<8x32xf32>
      %c0_10 = arith.constant 0 : index
      %c0_11 = arith.constant 0 : index
      %11 = vector.load %arg3[%c0_10, %c0_11] : memref<8x1xf32, #tpu.memory_space<vmem>>, vector<8x1xf32>
      %12 = vector.shape_cast %11 : vector<8x1xf32> to vector<8x1xf32>
      %13 = vector.broadcast %12 : vector<8x1xf32> to vector<8x32xf32>
      %c0_12 = arith.constant 0 : index
      %c0_13 = arith.constant 0 : index
      %14 = vector.load %arg4[%c0_12, %c0_13] : memref<1x32xf32, #tpu.memory_space<vmem>>, vector<1x32xf32>
      %15 = vector.shape_cast %14 : vector<1x32xf32> to vector<1x32xf32>
      %16 = vector.broadcast %15 : vector<1x32xf32> to vector<8x32xf32>
      %cst_14 = arith.constant 1.000000e+00 : f32
      %17 = vector.broadcast %cst_14 : f32 to vector<8x32xf32>
      %18 = arith.cmpf oge, %16, %17 : vector<8x32xf32>
      %cst_15 = arith.constant 1.000000e+00 : f32
      %19 = vector.broadcast %cst_15 : f32 to vector<8x32xf32>
      %20 = arith.select %18, %13, %19 : vector<8x32xi1>, vector<8x32xf32>
      %cst_16 = arith.constant 2.000000e+00 : f32
      %21 = vector.broadcast %cst_16 : f32 to vector<8x32xf32>
      %22 = arith.cmpf oge, %16, %21 : vector<8x32xf32>
      %cst_17 = arith.constant 1.000000e+00 : f32
      %23 = vector.broadcast %cst_17 : f32 to vector<8x32xf32>
      %24 = arith.select %22, %13, %23 : vector<8x32xi1>, vector<8x32xf32>
      %25 = arith.mulf %20, %24 : vector<8x32xf32>
      %26 = arith.mulf %10, %25 : vector<8x32xf32>
      %c0_18 = arith.constant 0 : index
      %c0_19 = arith.constant 0 : index
      %27 = vector.load %arg5[%c0_18, %c0_19] : memref<32x32xf32, #tpu.memory_space<vmem>>, vector<32x32xf32>
      %cst_20 = arith.constant dense<0.000000e+00> : vector<8x32xf32>
      %28 = tpu.matmul %26, %27, %cst_20 {dimension_numbers = #tpu.dot_dimension_numbers<[1], [0], [0], [1], [0, 0, 1, 1], [], []>} : vector<8x32xf32>, vector<32x32xf32>, vector<8x32xf32> -> vector<8x32xf32>
      %29 = arith.mulf %28, %26 : vector<8x32xf32>
      %cst_21 = arith.constant dense<0.000000e+00> : vector<8xf32>
      %30 = vector.multi_reduction <add>, %29, %cst_21 [1] : vector<8x32xf32> to vector<8xf32>
      %31 = vector.shape_cast %30 : vector<8xf32> to vector<8x1xf32>
      %cst_22 = arith.constant 1.000000e-30 : f32
      %32 = vector.broadcast %cst_22 : f32 to vector<8x1xf32>
      %33 = arith.addf %31, %32 : vector<8x1xf32>
      %34 = math.rsqrt %33 : vector<8x1xf32>
      %c0_23 = arith.constant 0 : index
      %c0_24 = arith.constant 0 : index
      %35 = vector.load %arg9[%c0_23, %c0_24] : memref<8x1xf32, #tpu.memory_space<vmem>>, vector<8x1xf32>
      tpu.vector_store %arg9[%c0_23, %c0_24], %34 {strides = array<i32>} : memref<8x1xf32, #tpu.memory_space<vmem>>, vector<8x1xf32>,
      %36 = arith.truncf %26 : vector<8x32xf32> to vector<8x32xbf16>
      %c0_25 = arith.constant 0 : index
      %c0_26 = arith.constant 0 : index
      %37 = vector.load %arg8[%c0_25, %c0_26] : memref<8x32xbf16, #tpu.memory_space<vmem>>, vector<8x32xbf16>
      tpu.vector_store %arg8[%c0_25, %c0_26], %36 {strides = array<i32>} : memref<8x32xbf16, #tpu.memory_space<vmem>>, vector<8x32xbf16>,
    } else {
    }
    %c0 = arith.constant 0 : index
    %c0_1 = arith.constant 0 : index
    %3 = vector.load %arg8[%c0, %c0_1] : memref<8x32xbf16, #tpu.memory_space<vmem>>, vector<8x32xbf16>
    %c0_2 = arith.constant 0 : index
    %c0_3 = arith.constant 0 : index
    %4 = vector.load %arg6[%c0_2, %c0_3] : memref<32x128xbf16, #tpu.memory_space<vmem>>, vector<32x128xbf16>
    %cst = arith.constant dense<0.000000e+00> : vector<8x128xf32>
    %5 = tpu.matmul %3, %4, %cst {dimension_numbers = #tpu.dot_dimension_numbers<[1], [0], [0], [1], [0, 0, 1, 1], [], []>} : vector<8x32xbf16>, vector<32x128xbf16>, vector<8x128xf32> -> vector<8x128xf32>
    %c0_4 = arith.constant 0 : index
    %c0_5 = arith.constant 0 : index
    %6 = vector.load %arg9[%c0_4, %c0_5] : memref<8x1xf32, #tpu.memory_space<vmem>>, vector<8x1xf32>
    %7 = vector.broadcast %6 : vector<8x1xf32> to vector<8x128xf32>
    %8 = arith.mulf %5, %7 : vector<8x128xf32>
    %c0_6 = arith.constant 0 : index
    %c0_7 = arith.constant 0 : index
    %9 = vector.load %arg7[%c0_6, %c0_7] : memref<8x128xf32, #tpu.memory_space<vmem>>, vector<8x128xf32>
    tpu.vector_store %arg7[%c0_6, %c0_7], %8 {strides = array<i32>} : memref<8x128xf32, #tpu.memory_space<vmem>>, vector<8x128xf32>,
    return
  }
  func.func @transform_0(%arg0: i32, %arg1: i32) -> (i32, i32) {
    %c0_i32 = arith.constant 0 : i32
    %c0_i32_0 = arith.constant 0 : i32
    return %arg0, %c0_i32 : i32, i32
  }
  func.func @transform_1(%arg0: i32, %arg1: i32) -> (i32, i32) {
    %c0_i32 = arith.constant 0 : i32
    %c0_i32_0 = arith.constant 0 : i32
    return %arg0, %c0_i32 : i32, i32
  }
  func.func @transform_2(%arg0: i32, %arg1: i32) -> (i32, i32) {
    %c0_i32 = arith.constant 0 : i32
    %c0_i32_0 = arith.constant 0 : i32
    %c0_i32_1 = arith.constant 0 : i32
    return %c0_i32, %c0_i32_0 : i32, i32
  }
  func.func @transform_3(%arg0: i32, %arg1: i32) -> (i32, i32) {
    %c0_i32 = arith.constant 0 : i32
    %c0_i32_0 = arith.constant 0 : i32
    %c0_i32_1 = arith.constant 0 : i32
    return %c0_i32, %c0_i32_0 : i32, i32
  }
  func.func @transform_4(%arg0: i32, %arg1: i32) -> (i32, i32) {
    %c0_i32 = arith.constant 0 : i32
    %c0_i32_0 = arith.constant 0 : i32
    return %c0_i32, %arg1 : i32, i32
  }
  func.func @transform_5(%arg0: i32, %arg1: i32) -> (i32, i32) {
    %c0_i32 = arith.constant 0 : i32
    return %arg0, %arg1 : i32, i32
  }
}

</mosaic_0001>

<bundles_post_ra>
// kernel: tpu_custom_call.1
= control target key start
LH: loop header
LB: loop body
LE: loop exit
PB: predicated region body
PF: predicated region fallthrough
CT: control target
= control target key end

     0   :  { %10 = vsyncpa [#allocation5], 0  ;;  %s342_s0 = inlined_call_operand.vmem [shape: f32[8,32], index: 0, kind: input, shape index: {}]   ;;  %s343_s1 = inlined_call_operand.vmem [shape: f32[8,1], index: 1, kind: input, shape index: {}]   ;;  %s344_s2 = inlined_call_operand.vmem [shape: f32[1,32], index: 2, kind: input, shape index: {}]   ;;  %s345_s3 = inlined_call_operand.hbm [shape: f32[32,32], index: 3, kind: input, shape index: {}]   ;;  %s346_s4 = inlined_call_operand.hbm [shape: bf16[32,128], index: 4, kind: input, shape index: {}]   ;;  %s347_s5 = inlined_call_operand.hbm [shape: f32[8,128], index: 5, kind: output, shape index: {}]  }
   0x1   :  { %11 = vsyncpa [#allocation8], 0 }
   0x2   :  { %12 = vsyncpa [#allocation6], 0  ;;  %s23_s20 = sshll.u32 %s345_s3, 4  ;;  %s286_s21 = smov [#allocation4]   ;;  %s24_s20 = int_to_ptr.hbm [resolvable:$true] %s23_s20 }
   0x3   :  { %s25_s22 = sshll.u32 %s286_s21, 4  ;;  %s36_s25 = sshll.u32 %s346_s4, 4  ;;  %s26_s22 = int_to_ptr.vmem [resolvable:$true] %s25_s22  ;;  %s37_s25 = int_to_ptr.hbm [resolvable:$true] %s36_s25 }
   0x4   :  { %s287_s26 = smov 128   ;;  %s288_s27 = smov 8  }
   0x5   :  { %31 = dma.hbm_to_vmem [thread:$0]  %s24_s20, 512, %s26_s22, [#allocation5], %s287_s26, %s287_s26, %s288_s27  }
   0x6   :  { %s289_s28 = smov [#allocation7]   ;;  %s290_s30 = smov 64  }
   0x7   :  { %s38_s29 = sshll.u32 %s289_s28, 4  ;;  %s291_s6 = smov 4   ;;  %s39_s29 = int_to_ptr.vmem [resolvable:$true] %s38_s29 }
   0x8   :  { %44 = dma.hbm_to_vmem [thread:$0]  %s37_s25, 256, %s39_s29, [#allocation8], %s290_s30, %s290_s30, %s291_s6  }
   0x9   :  { %280 = dma.done.wait [#allocation5], 512  }
   0xa   :  { %281 = vsyncadd [#allocation5], 4294966784 }
   0xb   :  { %282 = dma.done.wait [#allocation8], 256  }
   0xc   :  { %283 = vsyncadd [#allocation8], 4294967040  ;;  %v292_v0 = vmov 0   ;;  %v59_v1 = vld [vmem:[%s343_s1] sm:$0xff]  ;;  %v76_v4 = vld [vmem:[#allocation4 + $0x8] sm:$0xff]  ;;  %vm79_vm2 = vcmask 261120  }
   0xd   :  { %203 = vset.pattern.permute.xlu0 %v292_v0  ;;  %204 = vset.pattern.permute.xlu1 %v292_v0  ;;  %v78_v2 = vld [vmem:[#allocation4 + $0x18] sm:$0xff]  ;;  %v77_v3 = vld [vmem:[#allocation4 + $0x10] sm:$0xff]  ;;  %v75_v5 = vld [vmem:[#allocation4] sm:$0xff]  ;;  %vm121_vm3 = vcmask 257024   ;;  %vm118_vm5 = vcmask 7168   ;;  %s172_s12 = sshll.u32 %s347_s5, 4  ;;  %s173_s12 = int_to_ptr.hbm [resolvable:$true] %s172_s12 }
   0xe   :  { %62 = vperm.xlu0 %203, %v59_v1   ;;  %95 = vmatpush.msra.mxu0 %v78_v2  ;;  %v194_v6 = vld [vmem:[#allocation7 + $0x8] sm:$0xff]  ;;  %v193_v7 = vld [vmem:[#allocation7] sm:$0xff]  ;;  %v205_v8 = vld [vmem:[%s344_s2] ss:$0 sm:$0xff] }
   0xf   :  { %150 = vmatpush.bf16.msra.mxu1 %v194_v6  ;;  %vm69_vm0 = vcmp.ge.f32.partialorder %v205_v8, 1.0  ;;  %vm71_vm1 = vcmp.ge.f32.partialorder %v205_v8, 2.0  ;;  %v58_v12 = vld [vmem:[%s342_s0] sm:$0xff]  ;;  %s293_s0 = smov [#allocation9]  }
  0x10   :  { %96 = vmatpush.msra.mxu0 %v77_v3  ;;  %s170_s2 = sshll.u32 %s293_s0, 4  ;;  %s171_s2 = int_to_ptr.vmem [resolvable:$true] %s170_s2 }
  0x12   :  { %97 = vmatpush.msra.mxu0 %v76_v4 }
  0x13   :  { %151 = vmatpush.bf16.msra.mxu1 %v193_v7 }
  0x14   :  { %98 = vmatpush.msra.mxu0 %v75_v5 }
  0x80   :  { %v63_v9 = vpop.permute.xlu0 %62 }
  0x81   :  { %v70_v10 = vsel %vm69_vm0, %v63_v9, 1.0  ;;  %v72_v11 = vsel %vm71_vm1, %v63_v9, 1.0 }
  0x82   :  { %v73_v13 = vmul.f32 %v72_v11, %v70_v10 }
  0x84   :  { %v74_v14 = vmul.f32 %v73_v13, %v58_v12 }
  0x86   :  { %183 = vmatmul.msk.f32.vlgmr.msra.gmra.mxu0 %vm79_vm2, %v74_v14  ;;  %v120_v15 = vpack.c.bf16 %v74_v14, %v74_v14 }
  0x88   :  { %122 = vst.msk [vmem:[#allocation2] sm:$0xf] %vm121_vm3, %v120_v15 }
  0x8f   :  { %v123_v16 = vld [vmem:[#allocation2] sm:$0xf] }
  0x90   :  { %192 = vmatmul.msk.bf16.vlgmr.msra.gmra.mxu1 %vm79_vm2, %v123_v16 }
 0x103   :  { %v100_v17 = vpop.f32.mrf.mxu0 }
 0x104   :  { %v103_v18 = vmul.f32 %v100_v17, %v74_v14 }
 0x106   :  { %v104_v19 = vsel %vm79_vm2, %v103_v18, 0.0 }
 0x107   :  { %105 = vadd.xlane.f32.xlu0 %v104_v19 }
 0x10d   :  { %v153_v20 = vpop.f32.mrf.mxu1 }
 0x115   :  { %v155_v21 = vpop.f32.mrf.mxu1 }
 0x17a   :  { %v106_v22 = vpop.xlane.xlu0 %105 }
 0x17b   :  { %v107_v23 = vadd.f32 1e-30, %v106_v22 }
 0x17d   :  { %206 = vrsqrt.f32 %v107_v23  ;;  %vm114_vm6 = vweird.f32 %v107_v23 }
 0x183   :  { %v207_v24 = vpop.eup %206 }
 0x184   :  { %v109_v25 = vmul.f32 %v207_v24, %v107_v23  ;;  %vm115_vm4 = vweird.f32 %v207_v24 }
 0x185   :  { %vm116_vm7 = vmor %vm114_vm6, %vm115_vm4 }
 0x186   :  { %v110_v26 = vmul.f32 %v207_v24, %v109_v25 }
 0x188   :  { %v111_v27 = vmul.f32 0.5, %v110_v26 }
 0x18a   :  { %v112_v28 = vsub.f32 1.5, %v111_v27 }
 0x18c   :  { %v113_v29 = vmul.f32 %v207_v24, %v112_v28 }
 0x18e   :  { %v117_v30 = vsel %vm116_vm7, %v207_v24, %v113_v29 }
 0x18f   :  { %119 = vst.msk [vmem:[#allocation3] sm:$0xff] %vm118_vm5, %v117_v30 }
 0x196   :  { %v157_v31 = vld [vmem:[#allocation3] sm:$0xff] }
 0x197   :  { %160 = vperm.xlu1 %204, %v157_v31  }
 0x209   :  { %v161_v32 = vpop.permute.xlu1 %160 }
 0x20a   :  { %v163_v33 = vmul.f32 %v161_v32, %v153_v20 }
 0x20c   :  { %164 = vst [vmem:[#allocation9] sm:$0xff] %v163_v33 }
 0x20d   :  { %175 = dma.vmem_to_hbm [thread:$0]  %s171_s2, 128, %s173_s12, [#allocation6]  }
 0x20e   :  { %284 = dma.done.wait [#allocation6], 128  }
 0x20f   :  { %285 = vsyncadd [#allocation6], 4294967168 }
 0x210   :  { %180 = vsyncpa [#allocation5], 1 }
 0x211   :  { %181 = vsyncpa [#allocation8], 1 }
 0x212   :  { %182 = vsyncpa [#allocation6], 1 }

// kernel: tpu_custom_call.1
= control target key start
LH: loop header
LB: loop body
LE: loop exit
PB: predicated region body
PF: predicated region fallthrough
CT: control target
= control target key end

     0   :  { %10 = vsyncpa [#allocation5], 0  ;;  %s342_s0 = inlined_call_operand.vmem [shape: f32[8,32], index: 0, kind: input, shape index: {}]   ;;  %s343_s1 = inlined_call_operand.vmem [shape: f32[8,1], index: 1, kind: input, shape index: {}]   ;;  %s344_s2 = inlined_call_operand.vmem [shape: f32[1,32], index: 2, kind: input, shape index: {}]   ;;  %s345_s3 = inlined_call_operand.hbm [shape: f32[32,32], index: 3, kind: input, shape index: {}]   ;;  %s346_s4 = inlined_call_operand.hbm [shape: bf16[32,128], index: 4, kind: input, shape index: {}]   ;;  %s347_s5 = inlined_call_operand.hbm [shape: f32[8,128], index: 5, kind: output, shape index: {}]  }
   0x1   :  { %11 = vsyncpa [#allocation8], 0 }
   0x2   :  { %12 = vsyncpa [#allocation6], 0  ;;  %s23_s20 = sshll.u32 %s345_s3, 4  ;;  %s286_s21 = smov [#allocation4]   ;;  %s24_s20 = int_to_ptr.hbm [resolvable:$true] %s23_s20 }
   0x3   :  { %s25_s22 = sshll.u32 %s286_s21, 4  ;;  %s36_s25 = sshll.u32 %s346_s4, 4  ;;  %s26_s22 = int_to_ptr.vmem [resolvable:$true] %s25_s22  ;;  %s37_s25 = int_to_ptr.hbm [resolvable:$true] %s36_s25 }
   0x4   :  { %s287_s26 = smov 128   ;;  %s288_s27 = smov 8  }
   0x5   :  { %31 = dma.hbm_to_vmem [thread:$0]  %s24_s20, 512, %s26_s22, [#allocation5], %s287_s26, %s287_s26, %s288_s27  }
   0x6   :  { %s289_s28 = smov [#allocation7]   ;;  %s290_s30 = smov 64  }
   0x7   :  { %s38_s29 = sshll.u32 %s289_s28, 4  ;;  %s291_s6 = smov 4   ;;  %s39_s29 = int_to_ptr.vmem [resolvable:$true] %s38_s29 }
   0x8   :  { %44 = dma.hbm_to_vmem [thread:$0]  %s37_s25, 256, %s39_s29, [#allocation8], %s290_s30, %s290_s30, %s291_s6  }
   0x9   :  { %280 = dma.done.wait [#allocation5], 512  }
   0xa   :  { %281 = vsyncadd [#allocation5], 4294966784 }
   0xb   :  { %282 = dma.done.wait [#allocation8], 256  }
   0xc   :  { %283 = vsyncadd [#allocation8], 4294967040  ;;  %v292_v0 = vmov 0   ;;  %v59_v1 = vld [vmem:[%s343_s1] sm:$0xff]  ;;  %v76_v4 = vld [vmem:[#allocation4 + $0x8] sm:$0xff]  ;;  %vm79_vm2 = vcmask 261120  }
   0xd   :  { %203 = vset.pattern.permute.xlu0 %v292_v0  ;;  %204 = vset.pattern.permute.xlu1 %v292_v0  ;;  %v78_v2 = vld [vmem:[#allocation4 + $0x18] sm:$0xff]  ;;  %v77_v3 = vld [vmem:[#allocation4 + $0x10] sm:$0xff]  ;;  %v75_v5 = vld [vmem:[#allocation4] sm:$0xff]  ;;  %vm121_vm3 = vcmask 257024   ;;  %vm118_vm5 = vcmask 7168   ;;  %s172_s12 = sshll.u32 %s347_s5, 4  ;;  %s173_s12 = int_to_ptr.hbm [resolvable:$true] %s172_s12 }
   0xe   :  { %62 = vperm.xlu0 %203, %v59_v1   ;;  %95 = vmatpush.msra.mxu0 %v78_v2  ;;  %v194_v6 = vld [vmem:[#allocation7 + $0x8] sm:$0xff]  ;;  %v193_v7 = vld [vmem:[#allocation7] sm:$0xff]  ;;  %v205_v8 = vld [vmem:[%s344_s2] ss:$0 sm:$0xff] }
   0xf   :  { %150 = vmatpush.bf16.msra.mxu1 %v194_v6  ;;  %vm69_vm0 = vcmp.ge.f32.partialorder %v205_v8, 1.0  ;;  %vm71_vm1 = vcmp.ge.f32.partialorder %v205_v8, 2.0  ;;  %v58_v12 = vld [vmem:[%s342_s0] sm:$0xff]  ;;  %s293_s0 = smov [#allocation9]  }
  0x10   :  { %96 = vmatpush.msra.mxu0 %v77_v3  ;;  %s170_s2 = sshll.u32 %s293_s0, 4  ;;  %s171_s2 = int_to_ptr.vmem [resolvable:$true] %s170_s2 }
  0x12   :  { %97 = vmatpush.msra.mxu0 %v76_v4 }
  0x13   :  { %151 = vmatpush.bf16.msra.mxu1 %v193_v7 }
  0x14   :  { %98 = vmatpush.msra.mxu0 %v75_v5 }
  0x80   :  { %v63_v9 = vpop.permute.xlu0 %62 }
  0x81   :  { %v70_v10 = vsel %vm69_vm0, %v63_v9, 1.0  ;;  %v72_v11 = vsel %vm71_vm1, %v63_v9, 1.0 }
  0x82   :  { %v73_v13 = vmul.f32 %v72_v11, %v70_v10 }
  0x84   :  { %v74_v14 = vmul.f32 %v73_v13, %v58_v12 }
  0x86   :  { %183 = vmatmul.msk.f32.vlgmr.msra.gmra.mxu0 %vm79_vm2, %v74_v14  ;;  %v120_v15 = vpack.c.bf16 %v74_v14, %v74_v14 }
  0x88   :  { %122 = vst.msk [vmem:[#allocation2] sm:$0xf] %vm121_vm3, %v120_v15 }
  0x8f   :  { %v123_v16 = vld [vmem:[#allocation2] sm:$0xf] }
  0x90   :  { %192 = vmatmul.msk.bf16.vlgmr.msra.gmra.mxu1 %vm79_vm2, %v123_v16 }
 0x103   :  { %v100_v17 = vpop.f32.mrf.mxu0 }
 0x104   :  { %v103_v18 = vmul.f32 %v100_v17, %v74_v14 }
 0x106   :  { %v104_v19 = vsel %vm79_vm2, %v103_v18, 0.0 }
 0x107   :  { %105 = vadd.xlane.f32.xlu0 %v104_v19 }
 0x10d   :  { %v153_v20 = vpop.f32.mrf.mxu1 }
 0x115   :  { %v155_v21 = vpop.f32.mrf.mxu1 }
 0x17a   :  { %v106_v22 = vpop.xlane.xlu0 %105 }
 0x17b   :  { %v107_v23 = vadd.f32 1e-30, %v106_v22 }
 0x17d   :  { %206 = vrsqrt.f32 %v107_v23  ;;  %vm114_vm6 = vweird.f32 %v107_v23 }
 0x183   :  { %v207_v24 = vpop.eup %206 }
 0x184   :  { %v109_v25 = vmul.f32 %v207_v24, %v107_v23  ;;  %vm115_vm4 = vweird.f32 %v207_v24 }
 0x185   :  { %vm116_vm7 = vmor %vm114_vm6, %vm115_vm4 }
 0x186   :  { %v110_v26 = vmul.f32 %v207_v24, %v109_v25 }
 0x188   :  { %v111_v27 = vmul.f32 0.5, %v110_v26 }
 0x18a   :  { %v112_v28 = vsub.f32 1.5, %v111_v27 }
 0x18c   :  { %v113_v29 = vmul.f32 %v207_v24, %v112_v28 }
 0x18e   :  { %v117_v30 = vsel %vm116_vm7, %v207_v24, %v113_v29 }
 0x18f   :  { %119 = vst.msk [vmem:[#allocation3] sm:$0xff] %vm118_vm5, %v117_v30 }
 0x196   :  { %v157_v31 = vld [vmem:[#allocation3] sm:$0xff] }
 0x197   :  { %160 = vperm.xlu1 %204, %v157_v31  }
 0x209   :  { %v161_v32 = vpop.permute.xlu1 %160 }
 0x20a   :  { %v163_v33 = vmul.f32 %v161_v32, %v153_v20 }
 0x20c   :  { %164 = vst [vmem:[#allocation9] sm:$0xff] %v163_v33 }
 0x20d   :  { %175 = dma.vmem_to_hbm [thread:$0]  %s171_s2, 128, %s173_s12, [#allocation6]  }
 0x20e   :  { %284 = dma.done.wait [#allocation6], 128  }
 0x20f   :  { %285 = vsyncadd [#allocation6], 4294967168 }
 0x210   :  { %180 = vsyncpa [#allocation5], 1 }
 0x211   :  { %181 = vsyncpa [#allocation8], 1 }
 0x212   :  { %182 = vsyncpa [#allocation6], 1 }

</bundles_post_ra>
